<compile_context>
chip_gen: v7x
topology: tpu7x:2x2x1
jax: 0.10.0
libtpu: 0.0.40
codegen_flags: <defaults>
</compile_context>

<pallas_src>
import math
import functools

import jax
import jax.numpy as jnp
from jax import lax
from jax.experimental import pallas as pl
from jax.experimental.pallas import tpu as pltpu

EMBED_DIM = 32
NUM_HEADS = 4
HEAD_DIM = 8
SEQ = 16
BATCH = 2


def _attention_kernel(x_ref, wqkvT_ref, bqkv_ref, woutT_ref, bout_ref, o_ref,
                      *, batch, seq, num_heads, head_dim):
    # x_ref:     (B*S, E)       flattened activations
    # wqkvT_ref: (E, 3*H*D)     pre-transposed fused QKV weights (Q cols pre-scaled)
    # bqkv_ref:  (1, 3*H*D)     fused QKV bias (Q part pre-scaled)
    # woutT_ref: (H*D, E)       pre-transposed output projection
    # bout_ref:  (1, E)
    # o_ref:     (B*S, E)
    hd = num_heads * head_dim
    x = x_ref[...]                                              # (B*S, E) f32

    # One wide projection matmul (N = 3*H*D = 96) instead of 12 narrow ones.
    qkv = jnp.dot(x, wqkvT_ref[...],
                  preferred_element_type=jnp.float32) + bqkv_ref[...]   # (B*S, 96)

    batch_outs = []
    for b in range(batch):                                      # static loop (B = 2)
        r0 = b * seq                                            # sublane-aligned (S = 16)
        head_outs = []
        for h in range(num_heads):                              # static loop (H = 4)
            c = h * head_dim
            # Static lane slices (multiples of 8, single 128-lane tile) of the
            # live QKV result; softmax scale already folded into the Q columns.
            q = qkv[r0:r0 + seq, c:c + head_dim]                        # (S, D)
            k = qkv[r0:r0 + seq, hd + c:hd + c + head_dim]              # (S, D)
            v = qkv[r0:r0 + seq, 2 * hd + c:2 * hd + c + head_dim]      # (S, D)

            # q @ k^T without an explicit in-kernel transpose (contract last dims).
            scores = lax.dot_general(q, k, (((1,), (1,)), ((), ())),
                                     preferred_element_type=jnp.float32)  # (S, S)
            scores = scores - jnp.max(scores, axis=-1, keepdims=True)
            probs = jnp.exp(scores)
            probs = probs * pl.reciprocal(
                jnp.sum(probs, axis=-1, keepdims=True), approx=True)
            # dropout(p=0) is the identity; TODO(synk): no dropout mask (module default p=0).
            head_outs.append(jnp.dot(probs, v,
                                     preferred_element_type=jnp.float32))  # (S, D)

        batch_outs.append(jnp.concatenate(head_outs, axis=-1))  # (S, H*D) lane-concat
    concat = jnp.concatenate(batch_outs, axis=0)                # (B*S, H*D)

    # Single fused output projection: (B*S, H*D) @ (H*D, E).
    out = jnp.dot(concat, woutT_ref[...],
                  preferred_element_type=jnp.float32) + bout_ref[...]
    o_ref[...] = out.astype(o_ref.dtype)


def attention_pallas(x, w_qkv, b_qkv, w_out, b_out,
                     *, num_heads=NUM_HEADS, head_dim=HEAD_DIM):
    b, s, e = x.shape
    hd = num_heads * head_dim
    scale = 1.0 / math.sqrt(head_dim)

    # Flatten (B, S) so the projections run with M = B*S in one block.
    x_flat = x.reshape(b * s, e)

    # Weight prep outside the kernel (free in XLA):
    #   * fused, pre-transposed QKV weights (E, 3*H*D)
    #   * fold the 1/sqrt(D) scale into the Q columns / Q bias entries.
    scale_vec = jnp.concatenate([jnp.full((hd,), scale, jnp.float32),
                                 jnp.ones((2 * hd,), jnp.float32)])
    wqkv_t = w_qkv.T * scale_vec[None, :]                       # (E, 3*H*D)
    bqkv2 = (b_qkv * scale_vec).reshape(1, 3 * hd)              # (1, 3*H*D)
    wout_t = w_out.T                                            # (H*D, E)
    bout2 = b_out.reshape(1, e)                                 # (1, E)

    kernel = functools.partial(_attention_kernel,
                               batch=b, seq=s,
                               num_heads=num_heads, head_dim=head_dim)

    vmem_spec = pl.BlockSpec(memory_space=pltpu.MemorySpace.VMEM)

    out_flat = pl.pallas_call(
        kernel,
        out_shape=jax.ShapeDtypeStruct((b * s, e), x.dtype),
        # Gridless call: whole arrays resident in VMEM, no pipelining /
        # double-buffering overhead for a single-step problem.
        in_specs=[vmem_spec,   # x (flattened)
                  vmem_spec,   # W_qkv^T (fused, Q-scaled)
                  vmem_spec,   # b_qkv   (fused, Q-scaled)
                  vmem_spec,   # W_out^T
                  vmem_spec],  # b_out
        out_specs=vmem_spec,
    )(x_flat, wqkv_t, bqkv2, wout_t, bout2)

    return out_flat.reshape(b, s, e)


def attention_reference(x, w_qkv, b_qkv, w_out, b_out,
                        *, num_heads=NUM_HEADS, head_dim=HEAD_DIM):
    """Pure-JAX reference mirroring the PyTorch forward exactly."""
    b, s, _ = x.shape
    qkv = jnp.einsum('bse,fe->bsf', x, w_qkv) + b_qkv           # (b, s, 3*h*d)
    qkv = qkv.reshape(b, s, 3, num_heads, head_dim)             # (three, h, d) split order
    qkv = jnp.transpose(qkv, (0, 3, 1, 4, 2))                   # b h s d three
    q, k, v = qkv[..., 0], qkv[..., 1], qkv[..., 2]
    scores = jnp.einsum('bhqd,bhkd->bhqk', q, k) / math.sqrt(head_dim)
    probs = jax.nn.softmax(scores, axis=-1)
    out = jnp.einsum('bhqk,bhkd->bhqd', probs, v)               # (b, h, s, d)
    out = jnp.transpose(out, (0, 2, 1, 3)).reshape(b, s, num_heads * head_dim)
    return jnp.einsum('bsf,ef->bse', out, w_out) + b_out


def init_params(key, embed_dim, num_heads, head_dim):
    """Deterministic init mimicking nn.Linear defaults (uniform +/- 1/sqrt(fan_in))."""
    k1, k2, k3, k4 = jax.random.split(key, 4)
    three_hd = 3 * num_heads * head_dim
    hd = num_heads * head_dim
    lim1 = 1.0 / math.sqrt(embed_dim)
    lim2 = 1.0 / math.sqrt(hd)
    w_qkv = jax.random.uniform(k1, (three_hd, embed_dim), jnp.float32, -lim1, lim1)
    b_qkv = jax.random.uniform(k2, (three_hd,), jnp.float32, -lim1, lim1)
    w_out = jax.random.uniform(k3, (embed_dim, hd), jnp.float32, -lim2, lim2)
    b_out = jax.random.uniform(k4, (embed_dim,), jnp.float32, -lim2, lim2)
    return w_qkv, b_qkv, w_out, b_out


if __name__ == "__main__":
    key = jax.random.PRNGKey(0)
    kx, kp = jax.random.split(key)

    x = jax.random.normal(kx, (BATCH, SEQ, EMBED_DIM), jnp.float32)
    w_qkv, b_qkv, w_out, b_out = init_params(kp, EMBED_DIM, NUM_HEADS, HEAD_DIM)

    out = attention_pallas(x, w_qkv, b_qkv, w_out, b_out)
    out = jax.block_until_ready(out)

    ref = attention_reference(x, w_qkv, b_qkv, w_out, b_out)
    assert out.shape == (BATCH, SEQ, EMBED_DIM)
    # Tolerance loosened slightly vs 1e-4 because the softmax denominator uses
    # the EUP approximate reciprocal (pl.reciprocal(approx=True)).
    assert jnp.allclose(out, ref, atol=2e-3, rtol=2e-3), "mismatch vs reference"

    print("KERNEL_OK")
</pallas_src>

<mosaic_0001>
module attributes {stable_mosaic.version = 11 : i64} {
  func.func @_attention_kernel(%arg0: memref<32x32xf32, #tpu.memory_space<vmem>>, %arg1: memref<32x96xf32, #tpu.memory_space<vmem>>, %arg2: memref<1x96xf32, #tpu.memory_space<vmem>>, %arg3: memref<32x32xf32, #tpu.memory_space<vmem>>, %arg4: memref<1x32xf32, #tpu.memory_space<vmem>>, %arg5: memref<32x32xf32, #tpu.memory_space<vmem>>) attributes {dimension_semantics = [], scalar_prefetch = 0 : i64, scratch_operands = 0 : i64, tpu.core_type = #tpu.core_type<tc>} {
    %c0 = arith.constant 0 : index
    %c0_0 = arith.constant 0 : index
    %0 = vector.load %arg0[%c0, %c0_0] : memref<32x32xf32, #tpu.memory_space<vmem>>, vector<32x32xf32>
    %c0_1 = arith.constant 0 : index
    %c0_2 = arith.constant 0 : index
    %1 = vector.load %arg1[%c0_1, %c0_2] : memref<32x96xf32, #tpu.memory_space<vmem>>, vector<32x96xf32>
    %cst = arith.constant dense<0.000000e+00> : vector<32x96xf32>
    %2 = tpu.matmul %0, %1, %cst {dimension_numbers = #tpu.dot_dimension_numbers<[1], [0], [0], [1], [0, 0, 1, 1], [], []>} : vector<32x32xf32>, vector<32x96xf32>, vector<32x96xf32> -> vector<32x96xf32>
    %c0_3 = arith.constant 0 : index
    %c0_4 = arith.constant 0 : index
    %3 = vector.load %arg2[%c0_3, %c0_4] : memref<1x96xf32, #tpu.memory_space<vmem>>, vector<1x96xf32>
    %4 = vector.broadcast %3 : vector<1x96xf32> to vector<32x96xf32>
    %5 = arith.addf %2, %4 : vector<32x96xf32>
    %6 = vector.extract_strided_slice %5 {offsets = [0, 0], sizes = [16, 8], strides = [1, 1]} : vector<32x96xf32> to vector<16x8xf32>
    %7 = vector.extract_strided_slice %5 {offsets = [0, 32], sizes = [16, 8], strides = [1, 1]} : vector<32x96xf32> to vector<16x8xf32>
    %8 = vector.extract_strided_slice %5 {offsets = [0, 64], sizes = [16, 8], strides = [1, 1]} : vector<32x96xf32> to vector<16x8xf32>
    %cst_5 = arith.constant dense<0.000000e+00> : vector<16x16xf32>
    %9 = tpu.matmul %6, %7, %cst_5 {dimension_numbers = #tpu.dot_dimension_numbers<[1], [1], [0], [0], [0, 0, 1, 0], [], []>} : vector<16x8xf32>, vector<16x8xf32>, vector<16x16xf32> -> vector<16x16xf32>
    %cst_6 = arith.constant dense<0xFF800000> : vector<16xf32>
    %10 = vector.multi_reduction <maximumf>, %9, %cst_6 [1] : vector<16x16xf32> to vector<16xf32>
    %11 = vector.shape_cast %10 : vector<16xf32> to vector<16x1xf32>
    %12 = vector.broadcast %11 : vector<16x1xf32> to vector<16x16xf32>
    %13 = arith.subf %9, %12 : vector<16x16xf32>
    %14 = math.exp %13 : vector<16x16xf32>
    %cst_7 = arith.constant dense<0.000000e+00> : vector<16xf32>
    %15 = vector.multi_reduction <add>, %14, %cst_7 [1] : vector<16x16xf32> to vector<16xf32>
    %16 = vector.shape_cast %15 : vector<16xf32> to vector<16x1xf32>
    %17 = tpu.reciprocal %16 {approx = true} : vector<16x1xf32> -> vector<16x1xf32>
    %18 = vector.broadcast %17 : vector<16x1xf32> to vector<16x16xf32>
    %19 = arith.mulf %14, %18 : vector<16x16xf32>
    %cst_8 = arith.constant dense<0.000000e+00> : vector<16x8xf32>
    %20 = tpu.matmul %19, %8, %cst_8 {dimension_numbers = #tpu.dot_dimension_numbers<[1], [0], [0], [1], [0, 0, 1, 1], [], []>} : vector<16x16xf32>, vector<16x8xf32>, vector<16x8xf32> -> vector<16x8xf32>
    %21 = vector.extract_strided_slice %5 {offsets = [0, 8], sizes = [16, 8], strides = [1, 1]} : vector<32x96xf32> to vector<16x8xf32>
    %22 = vector.extract_strided_slice %5 {offsets = [0, 40], sizes = [16, 8], strides = [1, 1]} : vector<32x96xf32> to vector<16x8xf32>
    %23 = vector.extract_strided_slice %5 {offsets = [0, 72], sizes = [16, 8], strides = [1, 1]} : vector<32x96xf32> to vector<16x8xf32>
    %cst_9 = arith.constant dense<0.000000e+00> : vector<16x16xf32>
    %24 = tpu.matmul %21, %22, %cst_9 {dimension_numbers = #tpu.dot_dimension_numbers<[1], [1], [0], [0], [0, 0, 1, 0], [], []>} : vector<16x8xf32>, vector<16x8xf32>, vector<16x16xf32> -> vector<16x16xf32>
    %cst_10 = arith.constant dense<0xFF800000> : vector<16xf32>
    %25 = vector.multi_reduction <maximumf>, %24, %cst_10 [1] : vector<16x16xf32> to vector<16xf32>
    %26 = vector.shape_cast %25 : vector<16xf32> to vector<16x1xf32>
    %27 = vector.broadcast %26 : vector<16x1xf32> to vector<16x16xf32>
    %28 = arith.subf %24, %27 : vector<16x16xf32>
    %29 = math.exp %28 : vector<16x16xf32>
    %cst_11 = arith.constant dense<0.000000e+00> : vector<16xf32>
    %30 = vector.multi_reduction <add>, %29, %cst_11 [1] : vector<16x16xf32> to vector<16xf32>
    %31 = vector.shape_cast %30 : vector<16xf32> to vector<16x1xf32>
    %32 = tpu.reciprocal %31 {approx = true} : vector<16x1xf32> -> vector<16x1xf32>
    %33 = vector.broadcast %32 : vector<16x1xf32> to vector<16x16xf32>
    %34 = arith.mulf %29, %33 : vector<16x16xf32>
    %cst_12 = arith.constant dense<0.000000e+00> : vector<16x8xf32>
    %35 = tpu.matmul %34, %23, %cst_12 {dimension_numbers = #tpu.dot_dimension_numbers<[1], [0], [0], [1], [0, 0, 1, 1], [], []>} : vector<16x16xf32>, vector<16x8xf32>, vector<16x8xf32> -> vector<16x8xf32>
    %36 = vector.extract_strided_slice %5 {offsets = [0, 16], sizes = [16, 8], strides = [1, 1]} : vector<32x96xf32> to vector<16x8xf32>
    %37 = vector.extract_strided_slice %5 {offsets = [0, 48], sizes = [16, 8], strides = [1, 1]} : vector<32x96xf32> to vector<16x8xf32>
    %38 = vector.extract_strided_slice %5 {offsets = [0, 80], sizes = [16, 8], strides = [1, 1]} : vector<32x96xf32> to vector<16x8xf32>
    %cst_13 = arith.constant dense<0.000000e+00> : vector<16x16xf32>
    %39 = tpu.matmul %36, %37, %cst_13 {dimension_numbers = #tpu.dot_dimension_numbers<[1], [1], [0], [0], [0, 0, 1, 0], [], []>} : vector<16x8xf32>, vector<16x8xf32>, vector<16x16xf32> -> vector<16x16xf32>
    %cst_14 = arith.constant dense<0xFF800000> : vector<16xf32>
    %40 = vector.multi_reduction <maximumf>, %39, %cst_14 [1] : vector<16x16xf32> to vector<16xf32>
    %41 = vector.shape_cast %40 : vector<16xf32> to vector<16x1xf32>
    %42 = vector.broadcast %41 : vector<16x1xf32> to vector<16x16xf32>
    %43 = arith.subf %39, %42 : vector<16x16xf32>
    %44 = math.exp %43 : vector<16x16xf32>
    %cst_15 = arith.constant dense<0.000000e+00> : vector<16xf32>
    %45 = vector.multi_reduction <add>, %44, %cst_15 [1] : vector<16x16xf32> to vector<16xf32>
    %46 = vector.shape_cast %45 : vector<16xf32> to vector<16x1xf32>
    %47 = tpu.reciprocal %46 {approx = true} : vector<16x1xf32> -> vector<16x1xf32>
    %48 = vector.broadcast %47 : vector<16x1xf32> to vector<16x16xf32>
    %49 = arith.mulf %44, %48 : vector<16x16xf32>
    %cst_16 = arith.constant dense<0.000000e+00> : vector<16x8xf32>
    %50 = tpu.matmul %49, %38, %cst_16 {dimension_numbers = #tpu.dot_dimension_numbers<[1], [0], [0], [1], [0, 0, 1, 1], [], []>} : vector<16x16xf32>, vector<16x8xf32>, vector<16x8xf32> -> vector<16x8xf32>
    %51 = vector.extract_strided_slice %5 {offsets = [0, 24], sizes = [16, 8], strides = [1, 1]} : vector<32x96xf32> to vector<16x8xf32>
    %52 = vector.extract_strided_slice %5 {offsets = [0, 56], sizes = [16, 8], strides = [1, 1]} : vector<32x96xf32> to vector<16x8xf32>
    %53 = vector.extract_strided_slice %5 {offsets = [0, 88], sizes = [16, 8], strides = [1, 1]} : vector<32x96xf32> to vector<16x8xf32>
    %cst_17 = arith.constant dense<0.000000e+00> : vector<16x16xf32>
    %54 = tpu.matmul %51, %52, %cst_17 {dimension_numbers = #tpu.dot_dimension_numbers<[1], [1], [0], [0], [0, 0, 1, 0], [], []>} : vector<16x8xf32>, vector<16x8xf32>, vector<16x16xf32> -> vector<16x16xf32>
    %cst_18 = arith.constant dense<0xFF800000> : vector<16xf32>
    %55 = vector.multi_reduction <maximumf>, %54, %cst_18 [1] : vector<16x16xf32> to vector<16xf32>
    %56 = vector.shape_cast %55 : vector<16xf32> to vector<16x1xf32>
    %57 = vector.broadcast %56 : vector<16x1xf32> to vector<16x16xf32>
    %58 = arith.subf %54, %57 : vector<16x16xf32>
    %59 = math.exp %58 : vector<16x16xf32>
    %cst_19 = arith.constant dense<0.000000e+00> : vector<16xf32>
    %60 = vector.multi_reduction <add>, %59, %cst_19 [1] : vector<16x16xf32> to vector<16xf32>
    %61 = vector.shape_cast %60 : vector<16xf32> to vector<16x1xf32>
    %62 = tpu.reciprocal %61 {approx = true} : vector<16x1xf32> -> vector<16x1xf32>
    %63 = vector.broadcast %62 : vector<16x1xf32> to vector<16x16xf32>
    %64 = arith.mulf %59, %63 : vector<16x16xf32>
    %cst_20 = arith.constant dense<0.000000e+00> : vector<16x8xf32>
    %65 = tpu.matmul %64, %53, %cst_20 {dimension_numbers = #tpu.dot_dimension_numbers<[1], [0], [0], [1], [0, 0, 1, 1], [], []>} : vector<16x16xf32>, vector<16x8xf32>, vector<16x8xf32> -> vector<16x8xf32>
    %66 = tpu.concatenate %20, %35, %50, %65 in 1 : vector<16x8xf32>, vector<16x8xf32>, vector<16x8xf32>, vector<16x8xf32> -> vector<16x32xf32>
    %67 = vector.extract_strided_slice %5 {offsets = [16, 0], sizes = [16, 8], strides = [1, 1]} : vector<32x96xf32> to vector<16x8xf32>
    %68 = vector.extract_strided_slice %5 {offsets = [16, 32], sizes = [16, 8], strides = [1, 1]} : vector<32x96xf32> to vector<16x8xf32>
    %69 = vector.extract_strided_slice %5 {offsets = [16, 64], sizes = [16, 8], strides = [1, 1]} : vector<32x96xf32> to vector<16x8xf32>
    %cst_21 = arith.constant dense<0.000000e+00> : vector<16x16xf32>
    %70 = tpu.matmul %67, %68, %cst_21 {dimension_numbers = #tpu.dot_dimension_numbers<[1], [1], [0], [0], [0, 0, 1, 0], [], []>} : vector<16x8xf32>, vector<16x8xf32>, vector<16x16xf32> -> vector<16x16xf32>
    %cst_22 = arith.constant dense<0xFF800000> : vector<16xf32>
    %71 = vector.multi_reduction <maximumf>, %70, %cst_22 [1] : vector<16x16xf32> to vector<16xf32>
    %72 = vector.shape_cast %71 : vector<16xf32> to vector<16x1xf32>
    %73 = vector.broadcast %72 : vector<16x1xf32> to vector<16x16xf32>
    %74 = arith.subf %70, %73 : vector<16x16xf32>
    %75 = math.exp %74 : vector<16x16xf32>
    %cst_23 = arith.constant dense<0.000000e+00> : vector<16xf32>
    %76 = vector.multi_reduction <add>, %75, %cst_23 [1] : vector<16x16xf32> to vector<16xf32>
    %77 = vector.shape_cast %76 : vector<16xf32> to vector<16x1xf32>
    %78 = tpu.reciprocal %77 {approx = true} : vector<16x1xf32> -> vector<16x1xf32>
    %79 = vector.broadcast %78 : vector<16x1xf32> to vector<16x16xf32>
    %80 = arith.mulf %75, %79 : vector<16x16xf32>
    %cst_24 = arith.constant dense<0.000000e+00> : vector<16x8xf32>
    %81 = tpu.matmul %80, %69, %cst_24 {dimension_numbers = #tpu.dot_dimension_numbers<[1], [0], [0], [1], [0, 0, 1, 1], [], []>} : vector<16x16xf32>, vector<16x8xf32>, vector<16x8xf32> -> vector<16x8xf32>
    %82 = vector.extract_strided_slice %5 {offsets = [16, 8], sizes = [16, 8], strides = [1, 1]} : vector<32x96xf32> to vector<16x8xf32>
    %83 = vector.extract_strided_slice %5 {offsets = [16, 40], sizes = [16, 8], strides = [1, 1]} : vector<32x96xf32> to vector<16x8xf32>
    %84 = vector.extract_strided_slice %5 {offsets = [16, 72], sizes = [16, 8], strides = [1, 1]} : vector<32x96xf32> to vector<16x8xf32>
    %cst_25 = arith.constant dense<0.000000e+00> : vector<16x16xf32>
    %85 = tpu.matmul %82, %83, %cst_25 {dimension_numbers = #tpu.dot_dimension_numbers<[1], [1], [0], [0], [0, 0, 1, 0], [], []>} : vector<16x8xf32>, vector<16x8xf32>, vector<16x16xf32> -> vector<16x16xf32>
    %cst_26 = arith.constant dense<0xFF800000> : vector<16xf32>
    %86 = vector.multi_reduction <maximumf>, %85, %cst_26 [1] : vector<16x16xf32> to vector<16xf32>
    %87 = vector.shape_cast %86 : vector<16xf32> to vector<16x1xf32>
    %88 = vector.broadcast %87 : vector<16x1xf32> to vector<16x16xf32>
    %89 = arith.subf %85, %88 : vector<16x16xf32>
    %90 = math.exp %89 : vector<16x16xf32>
    %cst_27 = arith.constant dense<0.000000e+00> : vector<16xf32>
    %91 = vector.multi_reduction <add>, %90, %cst_27 [1] : vector<16x16xf32> to vector<16xf32>
    %92 = vector.shape_cast %91 : vector<16xf32> to vector<16x1xf32>
    %93 = tpu.reciprocal %92 {approx = true} : vector<16x1xf32> -> vector<16x1xf32>
    %94 = vector.broadcast %93 : vector<16x1xf32> to vector<16x16xf32>
    %95 = arith.mulf %90, %94 : vector<16x16xf32>
    %cst_28 = arith.constant dense<0.000000e+00> : vector<16x8xf32>
    %96 = tpu.matmul %95, %84, %cst_28 {dimension_numbers = #tpu.dot_dimension_numbers<[1], [0], [0], [1], [0, 0, 1, 1], [], []>} : vector<16x16xf32>, vector<16x8xf32>, vector<16x8xf32> -> vector<16x8xf32>
    %97 = vector.extract_strided_slice %5 {offsets = [16, 16], sizes = [16, 8], strides = [1, 1]} : vector<32x96xf32> to vector<16x8xf32>
    %98 = vector.extract_strided_slice %5 {offsets = [16, 48], sizes = [16, 8], strides = [1, 1]} : vector<32x96xf32> to vector<16x8xf32>
    %99 = vector.extract_strided_slice %5 {offsets = [16, 80], sizes = [16, 8], strides = [1, 1]} : vector<32x96xf32> to vector<16x8xf32>
    %cst_29 = arith.constant dense<0.000000e+00> : vector<16x16xf32>
    %100 = tpu.matmul %97, %98, %cst_29 {dimension_numbers = #tpu.dot_dimension_numbers<[1], [1], [0], [0], [0, 0, 1, 0], [], []>} : vector<16x8xf32>, vector<16x8xf32>, vector<16x16xf32> -> vector<16x16xf32>
    %cst_30 = arith.constant dense<0xFF800000> : vector<16xf32>
    %101 = vector.multi_reduction <maximumf>, %100, %cst_30 [1] : vector<16x16xf32> to vector<16xf32>
    %102 = vector.shape_cast %101 : vector<16xf32> to vector<16x1xf32>
    %103 = vector.broadcast %102 : vector<16x1xf32> to vector<16x16xf32>
    %104 = arith.subf %100, %103 : vector<16x16xf32>
    %105 = math.exp %104 : vector<16x16xf32>
    %cst_31 = arith.constant dense<0.000000e+00> : vector<16xf32>
    %106 = vector.multi_reduction <add>, %105, %cst_31 [1] : vector<16x16xf32> to vector<16xf32>
    %107 = vector.shape_cast %106 : vector<16xf32> to vector<16x1xf32>
    %108 = tpu.reciprocal %107 {approx = true} : vector<16x1xf32> -> vector<16x1xf32>
    %109 = vector.broadcast %108 : vector<16x1xf32> to vector<16x16xf32>
    %110 = arith.mulf %105, %109 : vector<16x16xf32>
    %cst_32 = arith.constant dense<0.000000e+00> : vector<16x8xf32>
    %111 = tpu.matmul %110, %99, %cst_32 {dimension_numbers = #tpu.dot_dimension_numbers<[1], [0], [0], [1], [0, 0, 1, 1], [], []>} : vector<16x16xf32>, vector<16x8xf32>, vector<16x8xf32> -> vector<16x8xf32>
    %112 = vector.extract_strided_slice %5 {offsets = [16, 24], sizes = [16, 8], strides = [1, 1]} : vector<32x96xf32> to vector<16x8xf32>
    %113 = vector.extract_strided_slice %5 {offsets = [16, 56], sizes = [16, 8], strides = [1, 1]} : vector<32x96xf32> to vector<16x8xf32>
    %114 = vector.extract_strided_slice %5 {offsets = [16, 88], sizes = [16, 8], strides = [1, 1]} : vector<32x96xf32> to vector<16x8xf32>
    %cst_33 = arith.constant dense<0.000000e+00> : vector<16x16xf32>
    %115 = tpu.matmul %112, %113, %cst_33 {dimension_numbers = #tpu.dot_dimension_numbers<[1], [1], [0], [0], [0, 0, 1, 0], [], []>} : vector<16x8xf32>, vector<16x8xf32>, vector<16x16xf32> -> vector<16x16xf32>
    %cst_34 = arith.constant dense<0xFF800000> : vector<16xf32>
    %116 = vector.multi_reduction <maximumf>, %115, %cst_34 [1] : vector<16x16xf32> to vector<16xf32>
    %117 = vector.shape_cast %116 : vector<16xf32> to vector<16x1xf32>
    %118 = vector.broadcast %117 : vector<16x1xf32> to vector<16x16xf32>
    %119 = arith.subf %115, %118 : vector<16x16xf32>
    %120 = math.exp %119 : vector<16x16xf32>
    %cst_35 = arith.constant dense<0.000000e+00> : vector<16xf32>
    %121 = vector.multi_reduction <add>, %120, %cst_35 [1] : vector<16x16xf32> to vector<16xf32>
    %122 = vector.shape_cast %121 : vector<16xf32> to vector<16x1xf32>
    %123 = tpu.reciprocal %122 {approx = true} : vector<16x1xf32> -> vector<16x1xf32>
    %124 = vector.broadcast %123 : vector<16x1xf32> to vector<16x16xf32>
    %125 = arith.mulf %120, %124 : vector<16x16xf32>
    %cst_36 = arith.constant dense<0.000000e+00> : vector<16x8xf32>
    %126 = tpu.matmul %125, %114, %cst_36 {dimension_numbers = #tpu.dot_dimension_numbers<[1], [0], [0], [1], [0, 0, 1, 1], [], []>} : vector<16x16xf32>, vector<16x8xf32>, vector<16x8xf32> -> vector<16x8xf32>
    %127 = tpu.concatenate %81, %96, %111, %126 in 1 : vector<16x8xf32>, vector<16x8xf32>, vector<16x8xf32>, vector<16x8xf32> -> vector<16x32xf32>
    %128 = tpu.concatenate %66, %127 in 0 : vector<16x32xf32>, vector<16x32xf32> -> vector<32x32xf32>
    %c0_37 = arith.constant 0 : index
    %c0_38 = arith.constant 0 : index
    %129 = vector.load %arg3[%c0_37, %c0_38] : memref<32x32xf32, #tpu.memory_space<vmem>>, vector<32x32xf32>
    %cst_39 = arith.constant dense<0.000000e+00> : vector<32x32xf32>
    %130 = tpu.matmul %128, %129, %cst_39 {dimension_numbers = #tpu.dot_dimension_numbers<[1], [0], [0], [1], [0, 0, 1, 1], [], []>} : vector<32x32xf32>, vector<32x32xf32>, vector<32x32xf32> -> vector<32x32xf32>
    %c0_40 = arith.constant 0 : index
    %c0_41 = arith.constant 0 : index
    %131 = vector.load %arg4[%c0_40, %c0_41] : memref<1x32xf32, #tpu.memory_space<vmem>>, vector<1x32xf32>
    %132 = vector.broadcast %131 : vector<1x32xf32> to vector<32x32xf32>
    %133 = arith.addf %130, %132 : vector<32x32xf32>
    %c0_42 = arith.constant 0 : index
    %c0_43 = arith.constant 0 : index
    %134 = vector.load %arg5[%c0_42, %c0_43] : memref<32x32xf32, #tpu.memory_space<vmem>>, vector<32x32xf32>
    tpu.vector_store %arg5[%c0_42, %c0_43], %133 {strides = array<i32>} : memref<32x32xf32, #tpu.memory_space<vmem>>, vector<32x32xf32>,
    return
  }
}

</mosaic_0001>

<bundles_post_ra>
// kernel: tpu_custom_call.1
= control target key start
LH: loop header
LB: loop body
LE: loop exit
PB: predicated region body
PF: predicated region fallthrough
CT: control target
= control target key end

     0   :  { %10 = vsyncpa [#allocation3], 0  ;;  %s2979_s0 = inlined_call_operand.hbm [shape: f32[32,32], index: 0, kind: input, shape index: {}]   ;;  %s2980_s1 = inlined_call_operand.hbm [shape: f32[32,96], index: 1, kind: input, shape index: {}]   ;;  %s2981_s2 = inlined_call_operand.vmem [shape: f32[1,96], index: 2, kind: input, shape index: {}]   ;;  %s2982_s3 = inlined_call_operand.hbm [shape: f32[32,32], index: 3, kind: input, shape index: {}]   ;;  %s2983_s4 = inlined_call_operand.vmem [shape: f32[1,32], index: 4, kind: input, shape index: {}]   ;;  %s2984_s5 = inlined_call_operand.hbm [shape: f32[32,32], index: 5, kind: output, shape index: {}]  }
   0x1   :  { %11 = vsyncpa [#allocation6], 0 }
   0x2   :  { %12 = vsyncpa [#allocation4], 0  ;;  %s2595_s18 = smov [#allocation5]   ;;  %s2596_s20 = smov [#allocation2]  }
   0x3   :  { %s30_s19 = sshll.u32 %s2595_s18, 4  ;;  %s18_s21 = sshll.u32 %s2596_s20, 4  ;;  %s31_s19 = int_to_ptr.vmem [resolvable:$true] %s30_s19  ;;  %s2644_s21 = int_to_ptr.vmem [resolvable:$true] %s18_s21 }
   0x4   :  { %s2501_s24 = scalar_lea.hbm %s2980_s1, 512 }
   0x5   :  { %p2502_p0 = scmp.ne.s32.totalorder %s2980_s1, %s2501_s24  ;;  %p2505_p1 = scmp.lt.u32.totalorder %s2501_s24, %s2980_s1 }
   0x7   :  { %p2507_p2 = pnand %p2505_p1, %p2502_p0 }
   0x9   :  { %2510 = shalt.err (!%p2507_p2)
}
   0xa   :  { %s2511_s29 = scalar_lea.vmem %s31_s19, 512  ;;  %p2516_p4 = scmp.lt.s32.totalorder %s31_s19, %s31_s19 }
   0xb   :  { %p2512_p3 = scmp.ne.s32.totalorder %s31_s19, %s2511_s29  ;;  %p2517_p5 = scmp.lt.s32.totalorder %s2511_s29, %s2511_s29 }
   0xd   :  { %p2518_p6 = por %p2517_p5, %p2516_p4 }
   0xf   :  { %p2519_p7 = pnand %p2518_p6, %p2512_p3 }
  0x11   :  { %2522 = shalt.err (!%p2519_p7)
}
  0x12   :  { %s2597_s30 = smov 128   ;;  %s2598_s6 = smov 8  }
  0x13   :  { %36 = dma.hbm_to_vmem [thread:$0]  %s2980_s1, 512, %s31_s19, [#allocation6], %s2597_s30, %s2597_s30, %s2598_s6  }
  0x14   :  { %s2523_s11 = scalar_lea.hbm %s2979_s0, 512 }
  0x15   :  { %p2524_p8 = scmp.ne.s32.totalorder %s2979_s0, %s2523_s11  ;;  %p2527_p9 = scmp.lt.u32.totalorder %s2523_s11, %s2979_s0 }
  0x17   :  { %p2529_p10 = pnand %p2527_p9, %p2524_p8 }
  0x19   :  { %2532 = shalt.err (!%p2529_p10)
}
  0x1a   :  { %s2533_s16 = scalar_lea.vmem %s2644_s21, 512  ;;  %p2538_p12 = scmp.lt.s32.totalorder %s2644_s21, %s2644_s21 }
  0x1b   :  { %p2534_p11 = scmp.ne.s32.totalorder %s2644_s21, %s2533_s16  ;;  %p2539_p13 = scmp.lt.s32.totalorder %s2533_s16, %s2533_s16 }
  0x1d   :  { %p2540_p0 = por %p2539_p13, %p2538_p12 }
  0x1f   :  { %p2541_p1 = pnand %p2540_p0, %p2534_p11 }
  0x21   :  { %2544 = shalt.err (!%p2541_p1)
}
  0x22   :  { %24 = dma.hbm_to_vmem [thread:$0]  %s2979_s0, 512, %s2644_s21, [#allocation3], %s2597_s30, %s2597_s30, %s2598_s6  }
  0x23   :  { %s2599_s18 = smov [#allocation7]   ;;  %s2545_s23 = scalar_lea.hbm %s2982_s3, 512 }
  0x24   :  { %s44_s19 = sshll.u32 %s2599_s18, 4  ;;  %p2546_p2 = scmp.ne.s32.totalorder %s2982_s3, %s2545_s23  ;;  %s45_s19 = int_to_ptr.vmem [resolvable:$true] %s44_s19 }
  0x25   :  { %p2549_p3 = scmp.lt.u32.totalorder %s2545_s23, %s2982_s3 }
  0x27   :  { %p2551_p4 = pnand %p2549_p3, %p2546_p2 }
  0x29   :  { %2554 = shalt.err (!%p2551_p4)
}
  0x2a   :  { %s2555_s28 = scalar_lea.vmem %s45_s19, 512  ;;  %p2560_p6 = scmp.lt.s32.totalorder %s45_s19, %s45_s19 }
  0x2b   :  { %p2556_p5 = scmp.ne.s32.totalorder %s45_s19, %s2555_s28  ;;  %p2561_p7 = scmp.lt.s32.totalorder %s2555_s28, %s2555_s28 }
  0x2d   :  { %p2562_p8 = por %p2561_p7, %p2560_p6 }
  0x2f   :  { %p2563_p9 = pnand %p2562_p8, %p2556_p5 }
  0x31   :  { %2566 = shalt.err (!%p2563_p9)
}
  0x32   :  { %50 = dma.hbm_to_vmem [thread:$0]  %s2982_s3, 512, %s45_s19, [#allocation6], %s2597_s30, %s2597_s30, %s2598_s6  }
  0x33   :  { %2589 = dma.done.wait [#allocation3], 512  }
  0x34   :  { %2590 = vsyncadd [#allocation3], 4294966784 }
  0x35   :  { %2591 = dma.done.wait [#allocation6], 1024  }
  0x36   :  { %2592 = vsyncadd [#allocation6], 4294966272  ;;  %vm77_vm0 = vcmask 261120   ;;  %v66_v0 = vld [vmem:[#allocation5] sm:$0xff]  ;;  %v67_v1 = vld [vmem:[#allocation5 + $0x8] sm:$0xff]  ;;  %vm181_vm1 = vcmask 64512  }
  0x37   :  { %v68_v2 = vld [vmem:[#allocation5 + $0x10] sm:$0xff]  ;;  %v2242_v3 = vpack.c.bf16 %v67_v1, %v66_v0  ;;  %v69_v4 = vld [vmem:[#allocation5 + $0x18] sm:$0xff]  ;;  %v62_v5 = vld [vmem:[#allocation2] sm:$0xff]  ;;  %s2600_s7 = smov 120   ;;  %s2602_s8 = smov 80   ;;  %vm265_vm3 = vcmask 130048  }
  0x38   :  { %v2246_v6 = vpack.c.bf16 %v69_v4, %v68_v2  ;;  %2110 = vmatprep.mubr.msk.f32.mxu1 %vm77_vm0, %v62_v5  ;;  %v63_v7 = vld [vmem:[#allocation2 + $0x8] sm:$0xff]  ;;  %v64_v8 = vld [vmem:[#allocation2 + $0x10] sm:$0xff]  ;;  %v65_v9 = vld [vmem:[#allocation2 + $0x18] sm:$0xff]  ;;  %s2603_s9 = smov 88   ;;  %s2604_s10 = smov 112   ;;  %vm1003_vm4 = vcmask 195584  }
  0x39   :  { %2243 = vmatprep.subr.bf16.mxu1 %v2242_v3  ;;  %v2703_v10 = vld [vmem:[%s2981_s2] ss:$0 sm:$0xff]  ;;  %s2601_s2 = smov 96   ;;  %vm2738_vm2 = vmpackc.low %vm181_vm1, %vm181_vm1  ;;  %s2605_s11 = smov 56  }
  0x3a   :  { %2245 = vmatpush3.bf16.msra.mxu1 %v2242_v3  ;;  %s2606_s12 = smov 64   ;;  %s2607_s13 = smov 48  }
  0x3b   :  { %2247 = vmatprep.subr.bf16.mxu1 %v2246_v6  ;;  %s2608_s14 = smov 72   ;;  %s2609_s15 = smov 104  }
  0x3c   :  { %s2610_s16 = smov 40   ;;  %s2611_s1 = smov 16  }
  0x3d   :  { %s2612_s17 = smov 24  }
  0x3e   :  { %2249 = vmatpush3.bf16.msra.mxu1 %v2246_v6 }
  0x41   :  { %2111 = vmatmul.mubr.msk.f32.vlgmr.msra.gmra.mrb[0].mxu1 %vm77_vm0, %v63_v7 }
  0x42   :  { %2113 = vmatprep.mubr.msk.f32.mxu1 %vm77_vm0, %v64_v8 }
  0x45   :  { %2114 = vmatmul.mubr.msk.f32.gmra.mrb[2].mxu1 %vm77_vm0, %v65_v9 }
 0x114   :  { %v2112_v11 = vpop.f32.mrb[0].mxu1 }
 0x115   :  { %v2706_v12 = vadd.f32 %v2112_v11, %v2703_v10  ;;  %v156_v13 = vpop.f32.mrb[1].mxu1 }
 0x116   :  { %v2709_v14 = vadd.f32 %v2703_v10, %v156_v13 }
 0x118   :  { %375 = vrot.lane.b32.xlu1 %v2709_v14, %s2600_s7  ;;  %2120 = vmatprep.mubr.msk.f32.mxu1 %vm181_vm1, %v2709_v14  ;;  %v2717_v15 = vpack.i.bf16 %v2706_v12, %v2709_v14  ;;  %v2731_v16 = vpop.f32.mrb[2].mxu1 }
 0x119   :  { %v2733_v17 = vpop.f32.mrb[3].mxu1 }
 0x11a   :  { %2358 = vrot.lane.b32.xlu0 %v2717_v15, %s2601_s2 }
 0x11c   :  { %2368 = vrot.lane.b32.xlu1 %v2717_v15, %s2602_s8 }
 0x11e   :  { %2363 = vrot.lane.b32.xlu0 %v2717_v15, %s2603_s9 }
 0x120   :  { %575 = vrot.lane.b32.xlu1 %v2709_v14, %s2604_s10 }
 0x122   :  { %377 = vrot.lane.b32.xlu0 %v2706_v12, %s2600_s7 }
 0x126   :  { %577 = vrot.lane.b32.xlu0 %v2706_v12, %s2604_s10 }
 0x18a   :  { %v376_v18 = vpop.permute.xlu1 %375 }
 0x18b   :  { %2134 = vmatprep.mubr.msk.f32.mxu0 %vm181_vm1, %v376_v18 }
 0x18c   :  { %v2359_v19 = vpop.permute.xlu0 %2358 }
 0x18d   :  { %v2361_v20 = vunpack.i.h.bf16 %v2359_v19  ;;  %v2360_v21 = vunpack.i.l.bf16 %v2359_v19 }
 0x18e   :  { %v2369_v22 = vpop.permute.xlu1 %2368 }
 0x18f   :  { %v2250_v24 = vpack.c.bf16 %v2361_v20, %v2360_v21  ;;  %v2371_v26 = vunpack.i.h.bf16 %v2369_v22  ;;  %v2370_v27 = vunpack.i.l.bf16 %v2369_v22 }
 0x190   :  { %v2364_v25 = vpop.permute.xlu0 %2363 }
 0x191   :  { %v2366_v28 = vunpack.i.h.bf16 %v2364_v25  ;;  %v2365_v29 = vunpack.i.l.bf16 %v2364_v25  ;;  %2252 = vmatprep.subr.msk.bf16.mxu1 %vm2738_vm2, %v2250_v24  ;;  %v2270_v31 = vpack.c.bf16 %v2371_v26, %v2370_v27 }
 0x192   :  { %2255 = vmatpush3.bf16.xpose.msk.msra.mxu1 %vm2738_vm2, %v2250_v24  ;;  %v576_v33 = vpop.permute.xlu1 %575 }
 0x193   :  { %v2260_v30 = vpack.c.bf16 %v2366_v28, %v2365_v29 }
 0x194   :  { %v378_v32 = vpop.permute.xlu0 %377 }
 0x195   :  { %2262 = vmatprep.subr.msk.bf16.mxu0 %vm2738_vm2, %v2260_v30 }
 0x196   :  { %2265 = vmatpush3.bf16.xpose.msk.msra.mxu0 %vm2738_vm2, %v2260_v30 }
 0x197   :  { %2272 = vmatprep.subr.msk.bf16.mxu0 %vm2738_vm2, %v2270_v31 }
 0x198   :  { %v578_v34 = vpop.permute.xlu0 %577 }
 0x199   :  { %2121 = vmatmul.mubr.msk.f32.vlgmr.msra.gmra.mrb[4].mxu1 %vm181_vm1, %v2706_v12 }
 0x19d   :  { %2135 = vmatmul.mubr.msk.f32.vlgmr.msra.gmra.mrb[0].mxu0 %vm181_vm1, %v378_v32 }
 0x19e   :  { %2275 = vmatpush3.bf16.xpose.msk.msra.mxu0 %vm2738_vm2, %v2270_v31  ;;  %2148 = vmatprep.mubr.msk.f32.mxu0 %vm181_vm1, %v576_v33 }
 0x1a5   :  { %2149 = vmatmul.mubr.msk.f32.vlgmr.msra.gmra.mrb[2].mxu0 %vm181_vm1, %v578_v34 }
 0x26c   :  { %v2122_v35 = vpop.f32.mrb[4].mxu1 }
 0x26d   :  { %v256_v36 = vpop.f32.mrb[5].mxu1  ;;  %v269_v37 = vsel %vm265_vm3, %v2122_v35, -inf }
 0x26e   :  { %270 = vmax.xlane.f32.xlu0 %v269_v37  ;;  %v266_v38 = vsel %vm265_vm3, %v256_v36, -inf }
 0x26f   :  { %267 = vmax.xlane.f32.xlu1 %v266_v38 }
 0x270   :  { %v2136_v39 = vpop.f32.mrb[0].mxu0 }
 0x271   :  { %v457_v40 = vpop.f32.mrb[1].mxu0  ;;  %v469_v41 = vsel %vm265_vm3, %v2136_v39, -inf }
 0x272   :  { %v466_v42 = vsel %vm265_vm3, %v457_v40, -inf }
 0x273   :  { %467 = vmax.xlane.f32.xlu0 %v466_v42  ;;  %470 = vmax.xlane.f32.xlu1 %v469_v41 }
 0x278   :  { %v2763_v43 = vpop.f32.mrb[2].mxu0 }
 0x279   :  { %v657_v44 = vpop.f32.mrb[3].mxu0  ;;  %v669_v45 = vsel %vm265_vm3, %v2763_v43, -inf }
 0x27a   :  { %670 = vmax.xlane.f32.xlu1 %v669_v45  ;;  %v666_v46 = vsel %vm265_vm3, %v657_v44, -inf }
 0x27b   :  { %667 = vmax.xlane.f32.xlu0 %v666_v46 }
 0x28b   :  { %2378 = vrot.lane.b32.xlu1 %v2717_v15, %s2605_s11 }
 0x291   :  { %2373 = vrot.lane.b32.xlu0 %v2717_v15, %s2606_s12 }
 0x2fb   :  { %v271_v47 = vpop.xlane.xlu0 %270 }
 0x2fc   :  { %v273_v48 = vsub.f32 %v2122_v35, %v271_v47  ;;  %v268_v49 = vpop.xlane.xlu1 %267 }
 0x2fd   :  { %v272_v50 = vsub.f32 %v256_v36, %v268_v49 }
 0x2fe   :  { %v276_v51 = vmul.f32 1.442695, %v273_v48 }
 0x2ff   :  { %v274_v52 = vmul.f32 1.442695, %v272_v50 }
 0x300   :  { %2437 = vpow2.f32 %v276_v51  ;;  %v468_v53 = vpop.xlane.xlu0 %467  ;;  %v471_v54 = vpop.xlane.xlu1 %470 }
 0x301   :  { %2439 = vpow2.f32 %v274_v52  ;;  %v472_v55 = vsub.f32 %v457_v40, %v468_v53  ;;  %v473_v56 = vsub.f32 %v2136_v39, %v471_v54 }
 0x303   :  { %v474_v57 = vmul.f32 1.442695, %v472_v55  ;;  %v476_v58 = vmul.f32 1.442695, %v473_v56 }
 0x305   :  { %2441 = vpow2.f32 %v474_v57 }
 0x306   :  { %2443 = vpow2.f32 %v476_v58 }
 0x307   :  { %v671_v59 = vpop.xlane.xlu1 %670 }
 0x308   :  { %v668_v60 = vpop.xlane.xlu0 %667  ;;  %v673_v24 = vsub.f32 %v2763_v43, %v671_v59 }
 0x309   :  { %v672_v61 = vsub.f32 %v657_v44, %v668_v60 }
 0x30a   :  { %v2438_v62 = vpop.eup %2437  ;;  %v676_v25 = vmul.f32 1.442695, %v673_v24 }
 0x30b   :  { %v2440_v63 = vpop.eup %2439  ;;  %v674_v0 = vmul.f32 1.442695, %v672_v61  ;;  %v2379_v1 = vpop.permute.xlu1 %2378  ;;  %v281_v2 = vsel %vm265_vm3, %v2438_v62, 0.0 }
 0x30c   :  { %v2381_v3 = vunpack.i.h.bf16 %v2379_v1  ;;  %v2374_v4 = vpop.permute.xlu0 %2373  ;;  %282 = vadd.xlane.f32.xlu1 %v281_v2  ;;  %v278_v5 = vsel %vm265_vm3, %v2440_v63, 0.0  ;;  %v2380_v6 = vunpack.i.l.bf16 %v2379_v1 }
 0x30d   :  { %2445 = vpow2.f32 %v674_v0  ;;  %v2376_v7 = vunpack.i.h.bf16 %v2374_v4  ;;  %v2375_v8 = vunpack.i.l.bf16 %v2374_v4  ;;  %279 = vadd.xlane.f32.xlu0 %v278_v5 }
 0x30e   :  { %v2266_v19 = vpack.c.bf16 %v2381_v3, %v2380_v6  ;;  %2447 = vpow2.f32 %v676_v25 }
 0x30f   :  { %v2442_v9 = vpop.eup %2441  ;;  %v2256_v11 = vpack.c.bf16 %v2376_v7, %v2375_v8 }
 0x310   :  { %v2444_v13 = vpop.eup %2443  ;;  %v478_v18 = vsel %vm265_vm3, %v2442_v9, 0.0 }
 0x311   :  { %2257 = vmatprep.subr.bf16.mxu1 %v2256_v11  ;;  %479 = vadd.xlane.f32.xlu0 %v478_v18  ;;  %v481_v20 = vsel %vm265_vm3, %v2444_v13, 0.0 }
 0x312   :  { %482 = vadd.xlane.f32.xlu1 %v481_v20  ;;  %2259 = vmatpush3.bf16.msra.mxu1 %v2256_v11  ;;  %v2817_v11 = vadd.f32 %v2731_v16, %v2703_v10 }
 0x313   :  { %2267 = vmatprep.subr.bf16.mxu1 %v2266_v19 }
 0x317   :  { %v2446_v21 = vpop.eup %2445 }
 0x318   :  { %v678_v22 = vsel %vm265_vm3, %v2446_v21, 0.0  ;;  %v2448_v26 = vpop.eup %2447 }
 0x319   :  { %679 = vadd.xlane.f32.xlu0 %v678_v22  ;;  %v681_v27 = vsel %vm265_vm3, %v2448_v26, 0.0 }
 0x323   :  { %2383 = vrot.lane.b32.xlu1 %v2717_v15, %s2607_s13 }
 0x32f   :  { %2388 = vrot.lane.b32.xlu0 %v2717_v15, %s2608_s14 }
 0x333   :  { %777 = vrot.lane.b32.xlu0 %v2706_v12, %s2609_s15 }
 0x347   :  { %682 = vadd.xlane.f32.xlu1 %v681_v27 }
 0x358   :  { %775 = vrot.lane.b32.xlu1 %v2709_v14, %s2609_s15 }
 0x399   :  { %v283_v28 = vpop.xlane.xlu1 %282 }
 0x39a   :  { %2449 = vrcp.f32 %v283_v28  ;;  %v280_v29 = vpop.xlane.xlu0 %279 }
 0x39b   :  { %2451 = vrcp.f32 %v280_v29 }
 0x39e   :  { %v480_v30 = vpop.xlane.xlu0 %479 }
 0x39f   :  { %2453 = vrcp.f32 %v480_v30  ;;  %v483_v31 = vpop.xlane.xlu1 %482 }
 0x3a0   :  { %2455 = vrcp.f32 %v483_v31 }
 0x3a3   :  { %v2384_v32 = vpop.permute.xlu1 %2383 }
 0x3a4   :  { %v2450_v33 = vpop.eup %2449  ;;  %v2386_v34 = vunpack.i.h.bf16 %v2384_v32  ;;  %v2385_v35 = vunpack.i.l.bf16 %v2384_v32 }
 0x3a5   :  { %v2452_v12 = vpop.eup %2451  ;;  %v287_v38 = vmul.f32 %v2450_v33, %v2438_v62 }
 0x3a6   :  { %v680_v36 = vpop.xlane.xlu0 %679  ;;  %v286_v37 = vmul.f32 %v2452_v12, %v2440_v63  ;;  %v2276_v39 = vpack.c.bf16 %v2386_v34, %v2385_v35 }
 0x3a7   :  { %2457 = vrcp.f32 %v680_v36 }
 0x3a8   :  { %2127 = vmatprep.mubr.msk.f32.mxu1 %vm265_vm3, %v286_v37 }
 0x3a9   :  { %v2454_v14 = vpop.eup %2453  ;;  %2128 = vmatmul.mubr.msk.f32.vlgmr.msra.gmra.mrb[6].mxu1 %vm265_vm3, %v287_v38 }
 0x3aa   :  { %v2456_v40 = vpop.eup %2455  ;;  %2269 = vmatpush3.bf16.msra.mxu1 %v2266_v19  ;;  %v2389_v41 = vpop.permute.xlu0 %2388  ;;  %v486_v42 = vmul.f32 %v2454_v14, %v2442_v9 }
 0x3ab   :  { %v487_v43 = vmul.f32 %v2456_v40, %v2444_v13  ;;  %v2391_v44 = vunpack.i.h.bf16 %v2389_v41  ;;  %v2390_v45 = vunpack.i.l.bf16 %v2389_v41  ;;  %2277 = vmatprep.subr.bf16.mxu1 %v2276_v39  ;;  %v2821_v13 = vadd.f32 %v2703_v10, %v2733_v17 }
 0x3ac   :  { %2141 = vmatprep.mubr.msk.f32.mxu1 %vm265_vm3, %v486_v42 }
 0x3ad   :  { %v2280_v46 = vpack.c.bf16 %v2391_v44, %v2390_v45  ;;  %2142 = vmatmul.mubr.msk.f32.vlgmr.msra.gmra.mrb[8].mxu1 %vm265_vm3, %v487_v43  ;;  %v2825_v18 = vpack.i.bf16 %v2817_v11, %v2821_v13 }
 0x3ae   :  { %2279 = vmatpush3.bf16.msra.mxu1 %v2276_v39  ;;  %v778_v53 = vpop.permute.xlu0 %777 }
 0x3af   :  { %2282 = vmatprep.subr.msk.bf16.mxu1 %vm2738_vm2, %v2280_v46 }
 0x3b1   :  { %v2458_v47 = vpop.eup %2457 }
 0x3b2   :  { %v686_v48 = vmul.f32 %v2458_v47, %v2446_v21 }
 0x3b4   :  { %2155 = vmatprep.mubr.msk.f32.mxu1 %vm265_vm3, %v686_v48 }
 0x3d4   :  { %v683_v49 = vpop.xlane.xlu1 %682 }
 0x3d5   :  { %2459 = vrcp.f32 %v683_v49 }
 0x3d8   :  { %v776_v52 = vpop.permute.xlu1 %775 }
 0x3df   :  { %v2460_v50 = vpop.eup %2459 }
 0x3e0   :  { %v687_v51 = vmul.f32 %v2460_v50, %v2448_v26 }
 0x3e2   :  { %2156 = vmatmul.mubr.msk.f32.vlgmr.msra.gmra.mrb[10].mxu1 %vm265_vm3, %v687_v51 }
 0x3e3   :  { %2285 = vmatpush3.bf16.xpose.msk.msra.mxu1 %vm2738_vm2, %v2280_v46  ;;  %2162 = vmatprep.mubr.msk.f32.mxu1 %vm181_vm1, %v776_v52 }
 0x3ea   :  { %2163 = vmatmul.mubr.msk.f32.vlgmr.msra.gmra.mrb[12].mxu1 %vm181_vm1, %v778_v53 }
 0x47c   :  { %v2799_v54 = vpop.f32.mrb[6].mxu1 }
 0x47d   :  { %v2801_v55 = vpop.f32.mrb[7].mxu1 }
 0x480   :  { %v2803_v56 = vpop.f32.mrb[8].mxu1 }
 0x481   :  { %v2805_v57 = vpop.f32.mrb[9].mxu1 }
 0x4b5   :  { %v2807_v58 = vpop.f32.mrb[10].mxu1 }
 0x4b6   :  { %v2809_v59 = vpop.f32.mrb[11].mxu1 }
 0x4bd   :  { %v2164_v60 = vpop.f32.mrb[12].mxu1 }
 0x4be   :  { %v857_v61 = vpop.f32.mrb[13].mxu1  ;;  %v869_v62 = vsel %vm265_vm3, %v2164_v60, -inf }
 0x4bf   :  { %870 = vmax.xlane.f32.xlu0 %v869_v62  ;;  %v866_v63 = vsel %vm265_vm3, %v857_v61, -inf }
 0x4c0   :  { %867 = vmax.xlane.f32.xlu1 %v866_v63 }
 0x54c   :  { %v871_v0 = vpop.xlane.xlu0 %870 }
 0x54d   :  { %v873_v1 = vsub.f32 %v2164_v60, %v871_v0  ;;  %v868_v2 = vpop.xlane.xlu1 %867 }
 0x54e   :  { %v872_v3 = vsub.f32 %v857_v61, %v868_v2 }
 0x54f   :  { %v876_v4 = vmul.f32 1.442695, %v873_v1 }
 0x550   :  { %v874_v5 = vmul.f32 1.442695, %v872_v3 }
 0x551   :  { %2461 = vpow2.f32 %v876_v4 }
 0x552   :  { %2463 = vpow2.f32 %v874_v5 }
 0x55b   :  { %v2462_v6 = vpop.eup %2461 }
 0x55c   :  { %v2464_v7 = vpop.eup %2463  ;;  %v881_v8 = vsel %vm265_vm3, %v2462_v6, 0.0 }
 0x55d   :  { %882 = vadd.xlane.f32.xlu1 %v881_v8  ;;  %v878_v9 = vsel %vm265_vm3, %v2464_v7, 0.0 }
 0x55e   :  { %879 = vadd.xlane.f32.xlu0 %v878_v9 }
 0x56e   :  { %2398 = vrot.lane.b32.xlu1 %v2825_v18, %s2601_s2 }
 0x574   :  { %2393 = vrot.lane.b32.xlu0 %v2717_v15, %s2610_s16 }
 0x5ea   :  { %v883_v19 = vpop.xlane.xlu1 %882 }
 0x5eb   :  { %2465 = vrcp.f32 %v883_v19  ;;  %v880_v20 = vpop.xlane.xlu0 %879 }
 0x5ec   :  { %2467 = vrcp.f32 %v880_v20 }
 0x5ee   :  { %v2399_v16 = vpop.permute.xlu1 %2398 }
 0x5ef   :  { %v2394_v21 = vpop.permute.xlu0 %2393  ;;  %v2401_v22 = vunpack.i.h.bf16 %v2399_v16  ;;  %v2400_v10 = vunpack.i.l.bf16 %v2399_v16 }
 0x5f0   :  { %v2396_v17 = vunpack.i.h.bf16 %v2394_v21  ;;  %v2395_v24 = vunpack.i.l.bf16 %v2394_v21 }
 0x5f1   :  { %v2290_v26 = vpack.c.bf16 %v2401_v22, %v2400_v10 }
 0x5f2   :  { %v2286_v25 = vpack.c.bf16 %v2396_v17, %v2395_v24 }
 0x5f4   :  { %2287 = vmatprep.subr.bf16.mxu0 %v2286_v25 }
 0x5f5   :  { %v2466_v27 = vpop.eup %2465  ;;  %2289 = vmatpush3.bf16.msra.mxu0 %v2286_v25 }
 0x5f6   :  { %v2468_v28 = vpop.eup %2467  ;;  %2292 = vmatprep.subr.msk.bf16.mxu0 %vm2738_vm2, %v2290_v26  ;;  %v887_v29 = vmul.f32 %v2466_v27, %v2462_v6 }
 0x5f7   :  { %v886_v15 = vmul.f32 %v2468_v28, %v2464_v7 }
 0x5f9   :  { %2169 = vmatprep.mubr.msk.f32.mxu0 %vm265_vm3, %v886_v15 }
 0x5fa   :  { %2170 = vmatmul.mubr.msk.f32.vlgmr.msra.gmra.mrb[4].mxu0 %vm265_vm3, %v887_v29 }
 0x5fb   :  { %2176 = vmatprep.mubr.msk.f32.mxu0 %vm181_vm1, %v2821_v13 }
 0x5fe   :  { %2295 = vmatpush3.bf16.xpose.msk.msra.mxu0 %vm2738_vm2, %v2290_v26 }
 0x605   :  { %2177 = vmatmul.mubr.msk.f32.vlgmr.msra.gmra.mrb[6].mxu0 %vm181_vm1, %v2817_v11 }
 0x6cd   :  { %v2841_v30 = vpop.f32.mrb[4].mxu0 }
 0x6ce   :  { %v2843_v31 = vpop.f32.mrb[5].mxu0 }
 0x6d8   :  { %v2178_v32 = vpop.f32.mrb[6].mxu0 }
 0x6d9   :  { %v1086_v33 = vpop.f32.mrb[7].mxu0  ;;  %v1098_v12 = vsel %vm265_vm3, %v2178_v32, -inf }
 0x6da   :  { %1099 = vmax.xlane.f32.xlu0 %v1098_v12  ;;  %v1095_v34 = vsel %vm265_vm3, %v1086_v33, -inf }
 0x6db   :  { %1096 = vmax.xlane.f32.xlu1 %v1095_v34 }
 0x767   :  { %v1100_v35 = vpop.xlane.xlu0 %1099 }
 0x768   :  { %v1102_v36 = vsub.f32 %v2178_v32, %v1100_v35  ;;  %v1097_v37 = vpop.xlane.xlu1 %1096 }
 0x769   :  { %v1101_v38 = vsub.f32 %v1086_v33, %v1097_v37 }
 0x76a   :  { %v1105_v14 = vmul.f32 1.442695, %v1102_v36 }
 0x76b   :  { %v1103_v39 = vmul.f32 1.442695, %v1101_v38 }
 0x76c   :  { %2469 = vpow2.f32 %v1105_v14 }
 0x76d   :  { %2471 = vpow2.f32 %v1103_v39 }
 0x776   :  { %v2470_v40 = vpop.eup %2469 }
 0x777   :  { %v2472_v41 = vpop.eup %2471  ;;  %v1110_v42 = vsel %vm265_vm3, %v2470_v40, 0.0 }
 0x778   :  { %1111 = vadd.xlane.f32.xlu1 %v1110_v42  ;;  %v1107_v43 = vsel %vm265_vm3, %v2472_v41, 0.0 }
 0x779   :  { %1108 = vadd.xlane.f32.xlu0 %v1107_v43 }
 0x789   :  { %2408 = vrot.lane.b32.xlu1 %v2825_v18, %s2603_s9 }
 0x78d   :  { %1204 = vrot.lane.b32.xlu1 %v2821_v13, %s2600_s7 }
 0x78f   :  { %2403 = vrot.lane.b32.xlu0 %v2825_v18, %s2606_s12 }
 0x793   :  { %1206 = vrot.lane.b32.xlu0 %v2817_v11, %s2600_s7 }
 0x805   :  { %v1112_v44 = vpop.xlane.xlu1 %1111 }
 0x806   :  { %2473 = vrcp.f32 %v1112_v44  ;;  %v1109_v45 = vpop.xlane.xlu0 %1108 }
 0x807   :  { %2475 = vrcp.f32 %v1109_v45 }
 0x809   :  { %v2409_v46 = vpop.permute.xlu1 %2408 }
 0x80a   :  { %v2404_v47 = vpop.permute.xlu0 %2403  ;;  %v2411_v48 = vunpack.i.h.bf16 %v2409_v46  ;;  %v2410_v49 = vunpack.i.l.bf16 %v2409_v46 }
 0x80b   :  { %v2406_v50 = vunpack.i.h.bf16 %v2404_v47  ;;  %v2405_v51 = vunpack.i.l.bf16 %v2404_v47 }
 0x80c   :  { %v2300_v53 = vpack.c.bf16 %v2411_v48, %v2410_v49 }
 0x80d   :  { %v2296_v52 = vpack.c.bf16 %v2406_v50, %v2405_v51  ;;  %v1205_v0 = vpop.permute.xlu1 %1204 }
 0x80e   :  { %v1207_v1 = vpop.permute.xlu0 %1206 }
 0x80f   :  { %2297 = vmatprep.subr.bf16.mxu1 %v2296_v52 }
 0x810   :  { %v2474_v60 = vpop.eup %2473  ;;  %2299 = vmatpush3.bf16.msra.mxu1 %v2296_v52 }
 0x811   :  { %v2476_v61 = vpop.eup %2475  ;;  %2302 = vmatprep.subr.msk.bf16.mxu1 %vm2738_vm2, %v2300_v53  ;;  %v1116_v63 = vmul.f32 %v2474_v60, %v2470_v40 }
 0x812   :  { %v1115_v62 = vmul.f32 %v2476_v61, %v2472_v41 }
 0x814   :  { %2183 = vmatprep.mubr.msk.f32.mxu1 %vm265_vm3, %v1115_v62 }
 0x815   :  { %2184 = vmatmul.mubr.msk.f32.vlgmr.msra.gmra.mrb[14].mxu1 %vm265_vm3, %v1116_v63 }
 0x816   :  { %2190 = vmatprep.mubr.msk.f32.mxu1 %vm181_vm1, %v1205_v0 }
 0x819   :  { %2305 = vmatpush3.bf16.xpose.msk.msra.mxu1 %vm2738_vm2, %v2300_v53 }
 0x820   :  { %2191 = vmatmul.mubr.msk.f32.vlgmr.msra.gmra.mrb[16].mxu1 %vm181_vm1, %v1207_v1 }
 0x8e8   :  { %v2865_v2 = vpop.f32.mrb[14].mxu1 }
 0x8e9   :  { %v2867_v3 = vpop.f32.mrb[15].mxu1 }
 0x8f3   :  { %v2192_v4 = vpop.f32.mrb[16].mxu1 }
 0x8f4   :  { %v1286_v5 = vpop.f32.mrb[17].mxu1  ;;  %v1298_v6 = vsel %vm265_vm3, %v2192_v4, -inf }
 0x8f5   :  { %1299 = vmax.xlane.f32.xlu0 %v1298_v6  ;;  %v1295_v7 = vsel %vm265_vm3, %v1286_v5, -inf }
 0x8f6   :  { %1296 = vmax.xlane.f32.xlu1 %v1295_v7 }
 0x982   :  { %v1300_v8 = vpop.xlane.xlu0 %1299 }
 0x983   :  { %v1302_v9 = vsub.f32 %v2192_v4, %v1300_v8  ;;  %v1297_v19 = vpop.xlane.xlu1 %1296 }
 0x984   :  { %v1301_v20 = vsub.f32 %v1286_v5, %v1297_v19 }
 0x985   :  { %v1305_v16 = vmul.f32 1.442695, %v1302_v9 }
 0x986   :  { %v1303_v21 = vmul.f32 1.442695, %v1301_v20 }
 0x987   :  { %2477 = vpow2.f32 %v1305_v16 }
 0x988   :  { %2479 = vpow2.f32 %v1303_v21 }
 0x991   :  { %v2478_v22 = vpop.eup %2477 }
 0x992   :  { %v2480_v10 = vpop.eup %2479  ;;  %v1310_v17 = vsel %vm265_vm3, %v2478_v22, 0.0 }
 0x993   :  { %1311 = vadd.xlane.f32.xlu1 %v1310_v17  ;;  %v1307_v24 = vsel %vm265_vm3, %v2480_v10, 0.0 }
 0x994   :  { %1308 = vadd.xlane.f32.xlu0 %v1307_v24 }
 0x9a4   :  { %2418 = vrot.lane.b32.xlu1 %v2825_v18, %s2602_s8 }
 0x9a8   :  { %1404 = vrot.lane.b32.xlu1 %v2821_v13, %s2604_s10 }
 0x9aa   :  { %2413 = vrot.lane.b32.xlu0 %v2825_v18, %s2605_s11 }
 0x9ae   :  { %1406 = vrot.lane.b32.xlu0 %v2817_v11, %s2604_s10 }
 0xa20   :  { %v1312_v25 = vpop.xlane.xlu1 %1311 }
 0xa21   :  { %2481 = vrcp.f32 %v1312_v25  ;;  %v1309_v26 = vpop.xlane.xlu0 %1308 }
 0xa22   :  { %2483 = vrcp.f32 %v1309_v26 }
 0xa24   :  { %v2419_v27 = vpop.permute.xlu1 %2418 }
 0xa25   :  { %v2414_v28 = vpop.permute.xlu0 %2413  ;;  %v2421_v15 = vunpack.i.h.bf16 %v2419_v27  ;;  %v2420_v29 = vunpack.i.l.bf16 %v2419_v27 }
 0xa26   :  { %v2416_v32 = vunpack.i.h.bf16 %v2414_v28  ;;  %v2415_v33 = vunpack.i.l.bf16 %v2414_v28 }
 0xa27   :  { %v2310_v34 = vpack.c.bf16 %v2421_v15, %v2420_v29 }
 0xa28   :  { %v2306_v12 = vpack.c.bf16 %v2416_v32, %v2415_v33  ;;  %v1405_v14 = vpop.permute.xlu1 %1404 }
 0xa29   :  { %v1407_v39 = vpop.permute.xlu0 %1406 }
 0xa2a   :  { %2307 = vmatprep.subr.bf16.mxu0 %v2306_v12 }
 0xa2b   :  { %v2482_v35 = vpop.eup %2481  ;;  %2309 = vmatpush3.bf16.msra.mxu0 %v2306_v12 }
 0xa2c   :  { %v2484_v36 = vpop.eup %2483  ;;  %2312 = vmatprep.subr.msk.bf16.mxu0 %vm2738_vm2, %v2310_v34  ;;  %v1316_v38 = vmul.f32 %v2482_v35, %v2478_v22 }
 0xa2d   :  { %v1315_v37 = vmul.f32 %v2484_v36, %v2480_v10  ;;  %v1835_v36 = vld [vmem:[#allocation7 + $0x8] sm:$0xff] }
 0xa2f   :  { %2197 = vmatprep.mubr.msk.f32.mxu0 %vm265_vm3, %v1315_v37 }
 0xa30   :  { %2198 = vmatmul.mubr.msk.f32.vlgmr.msra.gmra.mrb[8].mxu0 %vm265_vm3, %v1316_v38 }
 0xa31   :  { %2204 = vmatprep.mubr.msk.f32.mxu0 %vm181_vm1, %v1405_v14 }
 0xa34   :  { %2315 = vmatpush3.bf16.xpose.msk.msra.mxu0 %vm2738_vm2, %v2310_v34 }
 0xa3b   :  { %2205 = vmatmul.mubr.msk.f32.vlgmr.msra.gmra.mrb[10].mxu0 %vm181_vm1, %v1407_v39 }
 0xb03   :  { %v2889_v40 = vpop.f32.mrb[8].mxu0 }
 0xb04   :  { %v2891_v41 = vpop.f32.mrb[9].mxu0 }
 0xb0e   :  { %v2206_v42 = vpop.f32.mrb[10].mxu0 }
 0xb0f   :  { %v1486_v43 = vpop.f32.mrb[11].mxu0  ;;  %v1498_v44 = vsel %vm265_vm3, %v2206_v42, -inf }
 0xb10   :  { %1499 = vmax.xlane.f32.xlu0 %v1498_v44  ;;  %v1495_v45 = vsel %vm265_vm3, %v1486_v43, -inf }
 0xb11   :  { %1496 = vmax.xlane.f32.xlu1 %v1495_v45 }
 0xb9d   :  { %v1500_v46 = vpop.xlane.xlu0 %1499 }
 0xb9e   :  { %v1502_v47 = vsub.f32 %v2206_v42, %v1500_v46  ;;  %v1497_v48 = vpop.xlane.xlu1 %1496  ;;  %v1837_v42 = vld [vmem:[#allocation7 + $0x18] sm:$0xff] }
 0xb9f   :  { %v1501_v49 = vsub.f32 %v1486_v43, %v1497_v48 }
 0xba0   :  { %v1505_v50 = vmul.f32 1.442695, %v1502_v47 }
 0xba1   :  { %v1503_v51 = vmul.f32 1.442695, %v1501_v49 }
 0xba2   :  { %2485 = vpow2.f32 %v1505_v50 }
 0xba3   :  { %2487 = vpow2.f32 %v1503_v51 }
 0xbac   :  { %v2486_v52 = vpop.eup %2485 }
 0xbad   :  { %v2488_v53 = vpop.eup %2487  ;;  %v1510_v60 = vsel %vm265_vm3, %v2486_v52, 0.0 }
 0xbae   :  { %1511 = vadd.xlane.f32.xlu1 %v1510_v60  ;;  %v1507_v61 = vsel %vm265_vm3, %v2488_v53, 0.0 }
 0xbaf   :  { %1508 = vadd.xlane.f32.xlu0 %v1507_v61 }
 0xbbf   :  { %2428 = vrot.lane.b32.xlu1 %v2825_v18, %s2608_s14 }
 0xbc3   :  { %1604 = vrot.lane.b32.xlu1 %v2821_v13, %s2609_s15 }
 0xbc5   :  { %2423 = vrot.lane.b32.xlu0 %v2825_v18, %s2607_s13 }
 0xbc9   :  { %1606 = vrot.lane.b32.xlu0 %v2817_v11, %s2609_s15 }
 0xc3b   :  { %v1512_v62 = vpop.xlane.xlu1 %1511 }
 0xc3c   :  { %2489 = vrcp.f32 %v1512_v62  ;;  %v1509_v63 = vpop.xlane.xlu0 %1508 }
 0xc3d   :  { %2491 = vrcp.f32 %v1509_v63  ;;  %v2017_v63 = vld [vmem:[%s2983_s4] ss:$0 sm:$0xff]  ;;  %s2613_s4 = smov [#allocation8]  }
 0xc3e   :  { %s1951_s20 = sshll.u32 %s2613_s4, 4  ;;  %s1952_s20 = int_to_ptr.vmem [resolvable:$true] %s1951_s20 }
 0xc3f   :  { %v2429_v0 = vpop.permute.xlu1 %2428  ;;  %s2567_s22 = scalar_lea.vmem %s1952_s20, 512  ;;  %p2572_p11 = scmp.lt.s32.totalorder %s1952_s20, %s1952_s20 }
 0xc40   :  { %v2424_v1 = vpop.permute.xlu0 %2423  ;;  %v2431_v4 = vunpack.i.h.bf16 %v2429_v0  ;;  %v2430_v5 = vunpack.i.l.bf16 %v2429_v0  ;;  %p2568_p10 = scmp.ne.s32.totalorder %s1952_s20, %s2567_s22  ;;  %p2573_p12 = scmp.lt.s32.totalorder %s2567_s22, %s2567_s22 }
 0xc41   :  { %v2426_v6 = vunpack.i.h.bf16 %v2424_v1  ;;  %v2425_v7 = vunpack.i.l.bf16 %v2424_v1 }
 0xc42   :  { %v2320_v9 = vpack.c.bf16 %v2431_v4, %v2430_v5  ;;  %p2574_p13 = por %p2573_p12, %p2572_p11 }
 0xc43   :  { %v2316_v8 = vpack.c.bf16 %v2426_v6, %v2425_v7  ;;  %v1605_v16 = vpop.permute.xlu1 %1604 }
 0xc44   :  { %v1607_v21 = vpop.permute.xlu0 %1606  ;;  %p2575_p0 = pnand %p2574_p13, %p2568_p10 }
 0xc45   :  { %2317 = vmatprep.subr.bf16.mxu1 %v2316_v8 }
 0xc46   :  { %v2490_v13 = vpop.eup %2489  ;;  %2319 = vmatpush3.bf16.msra.mxu1 %v2316_v8 }
 0xc47   :  { %v2492_v19 = vpop.eup %2491  ;;  %2322 = vmatprep.subr.msk.bf16.mxu1 %vm2738_vm2, %v2320_v9  ;;  %v1516_v20 = vmul.f32 %v2490_v13, %v2486_v52 }
 0xc48   :  { %v1515_v11 = vmul.f32 %v2492_v19, %v2488_v53 }
 0xc4a   :  { %2211 = vmatprep.mubr.msk.f32.mxu1 %vm265_vm3, %v1515_v11 }
 0xc4b   :  { %2212 = vmatmul.mubr.msk.f32.vlgmr.msra.gmra.mrb[18].mxu1 %vm265_vm3, %v1516_v20 }
 0xc4c   :  { %2218 = vmatprep.mubr.msk.f32.mxu1 %vm181_vm1, %v1605_v16 }
 0xc4f   :  { %2325 = vmatpush3.bf16.xpose.msk.msra.mxu1 %vm2738_vm2, %v2320_v9 }
 0xc56   :  { %2219 = vmatmul.mubr.msk.f32.vlgmr.msra.gmra.mrb[20].mxu1 %vm181_vm1, %v1607_v21 }
 0xd1e   :  { %v2213_v22 = vpop.f32.mrb[18].mxu1 }
 0xd1f   :  { %v1595_v10 = vpop.f32.mrb[19].mxu1 }
 0xd29   :  { %v2220_v17 = vpop.f32.mrb[20].mxu1 }
 0xd2a   :  { %v1686_v24 = vpop.f32.mrb[21].mxu1  ;;  %v1698_v25 = vsel %vm265_vm3, %v2220_v17, -inf }
 0xd2b   :  { %1699 = vmax.xlane.f32.xlu0 %v1698_v25  ;;  %v1695_v26 = vsel %vm265_vm3, %v1686_v24, -inf }
 0xd2c   :  { %1696 = vmax.xlane.f32.xlu1 %v1695_v26 }
 0xdb8   :  { %v1700_v27 = vpop.xlane.xlu0 %1699 }
 0xdb9   :  { %v1702_v28 = vsub.f32 %v2220_v17, %v1700_v27  ;;  %v1697_v15 = vpop.xlane.xlu1 %1696 }
 0xdba   :  { %v1701_v29 = vsub.f32 %v1686_v24, %v1697_v15 }
 0xdbb   :  { %v1705_v32 = vmul.f32 1.442695, %v1702_v28 }
 0xdbc   :  { %v1703_v23 = vmul.f32 1.442695, %v1701_v29 }
 0xdbd   :  { %2493 = vpow2.f32 %v1705_v32 }
 0xdbe   :  { %2495 = vpow2.f32 %v1703_v23 }
 0xdc7   :  { %v2494_v33 = vpop.eup %2493 }
 0xdc8   :  { %v2496_v12 = vpop.eup %2495  ;;  %v1710_v34 = vsel %vm265_vm3, %v2494_v33, 0.0 }
 0xdc9   :  { %1711 = vadd.xlane.f32.xlu1 %v1710_v34  ;;  %v1707_v35 = vsel %vm265_vm3, %v2496_v12, 0.0 }
 0xdca   :  { %1708 = vadd.xlane.f32.xlu0 %v1707_v35 }
 0xdda   :  { %977 = vrot.lane.b32.xlu1 %v2805_v57, %s2598_s6 }
 0xdde   :  { %979 = vrot.lane.b32.xlu1 %v2803_v56, %s2598_s6 }
 0xde0   :  { %2433 = vrot.lane.b32.xlu0 %v2825_v18, %s2610_s16  ;;  %v1834_v18 = vld [vmem:[#allocation7] sm:$0xff] }
 0xde1   :  { %v2330_v14 = vpack.c.bf16 %v1835_v36, %v1834_v18 }
 0xde2   :  { %987 = vrot.lane.b32.xlu1 %v2807_v58, %s2611_s1 }
 0xde4   :  { %985 = vrot.lane.b32.xlu0 %v2809_v59, %s2611_s1 }
 0xde6   :  { %995 = vrot.lane.b32.xlu1 %v2841_v30, %s2612_s17 }
 0xde8   :  { %993 = vrot.lane.b32.xlu0 %v2843_v31, %s2612_s17 }
 0xdea   :  { %1808 = vrot.lane.b32.xlu1 %v2889_v40, %s2598_s6 }
 0xdec   :  { %1806 = vrot.lane.b32.xlu0 %v2891_v41, %s2598_s6  ;;  %v1836_v41 = vld [vmem:[#allocation7 + $0x10] sm:$0xff] }
 0xded   :  { %v2334_v49 = vpack.c.bf16 %v1837_v42, %v1836_v41 }
 0xdee   :  { %1816 = vrot.lane.b32.xlu1 %v2213_v22, %s2611_s1 }
 0xdf0   :  { %1814 = vrot.lane.b32.xlu0 %v1595_v10, %s2611_s1 }
 0xe56   :  { %v1712_v56 = vpop.xlane.xlu1 %1711 }
 0xe57   :  { %2497 = vrcp.f32 %v1712_v56  ;;  %v1709_v57 = vpop.xlane.xlu0 %1708 }
 0xe58   :  { %2499 = vrcp.f32 %v1709_v57 }
 0xe5a   :  { %v978_v58 = vpop.permute.xlu1 %977 }
 0xe5b   :  { %v2434_v59 = vpop.permute.xlu0 %2433  ;;  %v999_v47 = vsel %vm181_vm1, %v2801_v55, %v978_v58 }
 0xe5c   :  { %v2436_v30 = vunpack.i.h.bf16 %v2434_v59  ;;  %v2435_v37 = vunpack.i.l.bf16 %v2434_v59 }
 0xe5e   :  { %v2326_v38 = vpack.c.bf16 %v2436_v30, %v2435_v37  ;;  %v980_v31 = vpop.permute.xlu1 %979 }
 0xe5f   :  { %v986_v39 = vpop.permute.xlu0 %985  ;;  %v1000_v53 = vsel %vm181_vm1, %v2799_v54, %v980_v31 }
 0xe60   :  { %2327 = vmatprep.subr.bf16.mxu0 %v2326_v38  ;;  %v1001_v50 = vsel %vm265_vm3, %v999_v47, %v986_v39 }
 0xe61   :  { %v2498_v40 = vpop.eup %2497  ;;  %2329 = vmatpush3.bf16.msra.mxu0 %v2326_v38 }
 0xe62   :  { %v2500_v43 = vpop.eup %2499  ;;  %2331 = vmatprep.subr.bf16.mxu0 %v2330_v14  ;;  %v1716_v46 = vmul.f32 %v2498_v40, %v2494_v33  ;;  %v988_v48 = vpop.permute.xlu1 %987 }
 0xe63   :  { %v994_v44 = vpop.permute.xlu0 %993  ;;  %v1715_v45 = vmul.f32 %v2500_v43, %v2496_v12  ;;  %v1002_v55 = vsel %vm265_vm3, %v1000_v53, %v988_v48 }
 0xe64   :  { %v1004_v51 = vsel %vm1003_vm4, %v1001_v50, %v994_v44 }
 0xe65   :  { %2225 = vmatprep.mubr.msk.f32.mxu0 %vm265_vm3, %v1715_v45 }
 0xe66   :  { %2226 = vmatmul.mubr.msk.f32.vlgmr.msra.gmra.mrb[12].mxu0 %vm265_vm3, %v1716_v46  ;;  %v996_v52 = vpop.permute.xlu1 %995 }
 0xe67   :  { %2333 = vmatpush3.bf16.msra.mxu0 %v2330_v14  ;;  %2236 = vmatprep.mubr.msk.f32.mxu0 %vm77_vm0, %v1004_v51  ;;  %v1005_v60 = vsel %vm1003_vm4, %v1002_v55, %v996_v52  ;;  %v1807_v6 = vpop.permute.xlu0 %1806 }
 0xe68   :  { %2335 = vmatprep.subr.bf16.mxu0 %v2334_v49  ;;  %v1828_v9 = vsel %vm181_vm1, %v2867_v3, %v1807_v6 }
 0xe6a   :  { %v1809_v5 = vpop.permute.xlu1 %1808 }
 0xe6b   :  { %2337 = vmatpush3.bf16.msra.mxu0 %v2334_v49  ;;  %v1815_v8 = vpop.permute.xlu0 %1814  ;;  %v1829_v19 = vsel %vm181_vm1, %v2865_v2, %v1809_v5 }
 0xe6c   :  { %v1830_v11 = vsel %vm265_vm3, %v1828_v9, %v1815_v8 }
 0xe6e   :  { %2237 = vmatmul.mubr.msk.f32.vlgmr.msra.gmra.mrb[14].mxu0 %vm77_vm0, %v1005_v60  ;;  %v1817_v7 = vpop.permute.xlu1 %1816 }
 0xe6f   :  { %v1831_v16 = vsel %vm265_vm3, %v1829_v19, %v1817_v7 }
 0xf39   :  { %v2227_v61 = vpop.f32.mrb[12].mxu0 }
 0xf3a   :  { %1824 = vrot.lane.b32.xlu1 %v2227_v61, %s2612_s17  ;;  %v1795_v62 = vpop.f32.mrb[13].mxu0 }
 0xf3b   :  { %1822 = vrot.lane.b32.xlu0 %v1795_v62, %s2612_s17 }
 0xf41   :  { %v2238_v0 = vpop.f32.mrb[14].mxu0 }
 0xf42   :  { %v1929_v1 = vadd.f32 %v2238_v0, %v2017_v63  ;;  %v1923_v54 = vpop.f32.mrb[15].mxu0 }
 0xf43   :  { %v1924_v4 = vadd.f32 %v2017_v63, %v1923_v54 }
 0xf44   :  { %1943 = vst.msk [vmem:[#allocation8 + $0x8] sm:$0xff] %vm77_vm0, %v1929_v1 }
 0xf45   :  { %1942 = vst.msk [vmem:[#allocation8] sm:$0xff] %vm77_vm0, %v1924_v4 }
 0xfac   :  { %v1825_v13 = vpop.permute.xlu1 %1824 }
 0xfad   :  { %v1823_v20 = vpop.permute.xlu0 %1822  ;;  %v1833_v22 = vsel %vm1003_vm4, %v1831_v16, %v1825_v13 }
 0xfae   :  { %v1832_v21 = vsel %vm1003_vm4, %v1830_v11, %v1823_v20 }
 0xfaf   :  { %2239 = vmatprep.mubr.msk.f32.mxu0 %vm77_vm0, %v1832_v21 }
 0xfb0   :  { %2240 = vmatmul.mubr.msk.f32.gmra.mrb[16].mxu0 %vm77_vm0, %v1833_v22 }
0x1083   :  { %v2241_v3 = vpop.f32.mrb[16].mxu0 }
0x1084   :  { %v1939_v10 = vadd.f32 %v2241_v3, %v2017_v63  ;;  %v1933_v17 = vpop.f32.mrb[17].mxu0 }
0x1085   :  { %v1934_v24 = vadd.f32 %v2017_v63, %v1933_v17 }
0x1086   :  { %1945 = vst.msk [vmem:[#allocation8 + $0x18] sm:$0xff] %vm77_vm0, %v1939_v10 }
0x1087   :  { %1944 = vst.msk [vmem:[#allocation8 + $0x10] sm:$0xff] %vm77_vm0, %v1934_v24 }
0x1088   :  { %2578 = shalt.err (!%p2575_p0)
}
0x1089   :  { %s2579_s25 = scalar_lea.hbm %s2984_s5, 512 }
0x108a   :  { %p2580_p1 = scmp.ne.s32.totalorder %s2984_s5, %s2579_s25  ;;  %p2583_p2 = scmp.lt.u32.totalorder %s2579_s25, %s2984_s5 }
0x108c   :  { %p2585_p3 = pnand %p2583_p2, %p2580_p1 }
0x108e   :  { %2588 = shalt.err (!%p2585_p3)
}
0x108f   :  { %1957 = dma.vmem_to_hbm [thread:$0]  %s1952_s20, 512, %s2984_s5, [#allocation4], %s2597_s30, %s2597_s30, %s2598_s6  }
0x1090   :  { %2593 = dma.done.wait [#allocation4], 512  }
0x1091   :  { %2594 = vsyncadd [#allocation4], 4294966784 }
0x1092   :  { %1961 = vsyncpa [#allocation3], 1 }
0x1093   :  { %1962 = vsyncpa [#allocation6], 1 }
0x1094   :  { %1963 = vsyncpa [#allocation4], 1 }

</bundles_post_ra>
